<compile_context>
chip_gen: v5e
topology: v5e:2x2
jax: 0.10.0
libtpu: 0.0.40
codegen_flags: <defaults>
</compile_context>

<pallas_src>
import jax
import jax.numpy as jnp
from jax.experimental import pallas as pl
from jax.experimental.pallas import tpu as pltpu

IN_F = 3
HID_F = 4
OUT_F = 5


def fused_mlp_kernel(wc_ref, bc_ref, x_ref, o_ref):
    # wc_ref: (15,) f32 SMEM  -- fused weight (3,5), row-major flattened
    # bc_ref: (5,)  f32 SMEM  -- fused bias
    # x_ref : (3, tb) f32 VMEM -- feature-major input slab (batch on lanes)
    # o_ref : (5, tb) f32 VMEM -- feature-major output slab
    x0 = x_ref[0:1, :]
    x1 = x_ref[1:2, :]
    x2 = x_ref[2:3, :]
    # Static unroll: 15 scalar-splat multiply-adds + 5 splat bias adds on the
    # VPU; all data movement along the dense lane (batch) axis.
    for j in range(OUT_F):
        o_ref[j:j + 1, :] = (bc_ref[j]
                             + wc_ref[j] * x0
                             + wc_ref[OUT_F + j] * x1
                             + wc_ref[2 * OUT_F + j] * x2)


def _fuse_params(w1, b1, w2, b2):
    # Exact fusion of fc2(fc1(x)) (no activation in between).
    wc = w1.T @ w2.T                       # (3, 5)
    bc = (b1 @ w2.T + b2).reshape(OUT_F)   # (5,)
    return wc.reshape(-1), bc              # (15,), (5,)


def _round_up(v, m):
    return ((v + m - 1) // m) * m


def ann_forward_fm(x_fm, w1, b1, w2, b2, *, block_b=65536):
    """Feature-major forward: x_fm (3, B) f32 -> (5, B) f32."""
    in_f, B = x_fm.shape
    assert in_f == IN_F
    wc_flat, bc = _fuse_params(w1, b1, w2, b2)

    if B <= 128:
        tb = B  # single block covering the full batch (block dim == array dim)
    else:
        # Lane-aligned tile; keep >= 4 grid blocks when the batch is large so
        # v7x's two TensorCores both get work via the "parallel" axis, and cap
        # at block_b so double-buffered VMEM stays a few MiB on every gen.
        tb = max(128, min(block_b, _round_up(pl.cdiv(B, 4), 128)))
    n_blocks = pl.cdiv(B, tb)

    return pl.pallas_call(
        fused_mlp_kernel,
        out_shape=jax.ShapeDtypeStruct((OUT_F, B), jnp.float32),
        grid=(n_blocks,),
        in_specs=[
            pl.BlockSpec(memory_space=pltpu.MemorySpace.SMEM),   # fused weights
            pl.BlockSpec(memory_space=pltpu.MemorySpace.SMEM),   # fused bias
            pl.BlockSpec((IN_F, tb), lambda i: (0, i)),          # streamed x slab
        ],
        out_specs=pl.BlockSpec((OUT_F, tb), lambda i: (0, i)),
        compiler_params=pltpu.CompilerParams(
            dimension_semantics=("parallel",)),
    )(wc_flat, bc, x_fm)


def ann_forward(x, w1, b1, w2, b2, *, block_b=65536):
    """Row-major convenience wrapper matching the PyTorch module: (B,3)->(B,5).
    For large batches, prefer ann_forward_fm and keep data feature-major end to
    end so the boundary transposes (extra HBM passes) disappear."""
    return ann_forward_fm(x.T, w1, b1, w2, b2, block_b=block_b).T


def init_params(key):
    """Deterministic init mimicking PyTorch nn.Linear default
    (uniform(-1/sqrt(fan_in), 1/sqrt(fan_in)))."""
    k1, k2, k3, k4 = jax.random.split(key, 4)
    bound1 = 1.0 / jnp.sqrt(3.0)
    bound2 = 1.0 / jnp.sqrt(4.0)
    w1 = jax.random.uniform(k1, (HID_F, IN_F), jnp.float32, -bound1, bound1)
    b1 = jax.random.uniform(k2, (1, HID_F), jnp.float32, -bound1, bound1)
    w2 = jax.random.uniform(k3, (OUT_F, HID_F), jnp.float32, -bound2, bound2)
    b2 = jax.random.uniform(k4, (1, OUT_F), jnp.float32, -bound2, bound2)
    return w1, b1, w2, b2


def _reference(x, w1, b1, w2, b2):
    # Pure-JAX reference with the original (unfused) two-layer semantics.
    return (x @ w1.T + b1) @ w2.T + b2


if __name__ == "__main__":
    key = jax.random.PRNGKey(0)
    w1, b1, w2, b2 = init_params(key)

    # Small batch of 3-feature inputs; row 0 reproduces the module's example
    # data [1, 2, 3] exactly.
    B = 32
    x = jax.random.normal(jax.random.PRNGKey(1), (B, IN_F), dtype=jnp.float32)
    x = x.at[0].set(jnp.array([1.0, 2.0, 3.0], dtype=jnp.float32))

    out = jax.block_until_ready(ann_forward(x, w1, b1, w2, b2))
    ref = _reference(x, w1, b1, w2, b2)
    assert out.shape == (B, OUT_F)
    assert jnp.allclose(out, ref, atol=1e-5, rtol=1e-5), "mismatch vs reference"

    # Exercise the multi-block + ragged-last-block path (no pad / no slice).
    B2 = 300
    x2 = jax.random.normal(jax.random.PRNGKey(2), (B2, IN_F), dtype=jnp.float32)
    out2 = jax.block_until_ready(ann_forward(x2, w1, b1, w2, b2, block_b=128))
    ref2 = _reference(x2, w1, b1, w2, b2)
    assert out2.shape == (B2, OUT_F)
    assert jnp.allclose(out2, ref2, atol=1e-5, rtol=1e-5), "mismatch (ragged)"

    print("KERNEL_OK")
</pallas_src>

<mosaic_0001>
module attributes {stable_mosaic.version = 11 : i64} {
  func.func @fused_mlp_kernel(%arg0: i32, %arg1: memref<15xf32, #tpu.memory_space<smem>>, %arg2: memref<5xf32, #tpu.memory_space<smem>>, %arg3: memref<3x32xf32, #tpu.memory_space<vmem>>, %arg4: memref<5x32xf32, #tpu.memory_space<vmem>>) attributes {dimension_semantics = [#tpu.dimension_semantics<parallel>], iteration_bounds = array<i64: 1>, scalar_prefetch = 0 : i64, scratch_operands = 0 : i64, tpu.core_type = #tpu.core_type<tc>, window_params = [{transform_indices = @transform_0, window_bounds = array<i64: 15>}, {transform_indices = @transform_1, window_bounds = array<i64: 5>}, {transform_indices = @transform_2, window_bounds = array<i64: 3, 32>}, {transform_indices = @transform_3, window_bounds = array<i64: 5, 32>}]} {
    %c0 = arith.constant 0 : index
    %c0_0 = arith.constant 0 : index
    %0 = vector.load %arg3[%c0, %c0_0] : memref<3x32xf32, #tpu.memory_space<vmem>>, vector<1x32xf32>
    %c1 = arith.constant 1 : index
    %c0_1 = arith.constant 0 : index
    %1 = vector.load %arg3[%c1, %c0_1] : memref<3x32xf32, #tpu.memory_space<vmem>>, vector<1x32xf32>
    %c2 = arith.constant 2 : index
    %c0_2 = arith.constant 0 : index
    %2 = vector.load %arg3[%c2, %c0_2] : memref<3x32xf32, #tpu.memory_space<vmem>>, vector<1x32xf32>
    %c0_3 = arith.constant 0 : index
    %3 = memref.load %arg2[%c0_3] : memref<5xf32, #tpu.memory_space<smem>>
    %c0_4 = arith.constant 0 : index
    %4 = memref.load %arg1[%c0_4] : memref<15xf32, #tpu.memory_space<smem>>
    %5 = vector.broadcast %4 : f32 to vector<1x32xf32>
    %6 = arith.mulf %5, %0 : vector<1x32xf32>
    %7 = vector.broadcast %3 : f32 to vector<1x32xf32>
    %8 = arith.addf %7, %6 : vector<1x32xf32>
    %c5 = arith.constant 5 : index
    %9 = memref.load %arg1[%c5] : memref<15xf32, #tpu.memory_space<smem>>
    %10 = vector.broadcast %9 : f32 to vector<1x32xf32>
    %11 = arith.mulf %10, %1 : vector<1x32xf32>
    %12 = arith.addf %8, %11 : vector<1x32xf32>
    %c10 = arith.constant 10 : index
    %13 = memref.load %arg1[%c10] : memref<15xf32, #tpu.memory_space<smem>>
    %14 = vector.broadcast %13 : f32 to vector<1x32xf32>
    %15 = arith.mulf %14, %2 : vector<1x32xf32>
    %16 = arith.addf %12, %15 : vector<1x32xf32>
    %c0_5 = arith.constant 0 : index
    %c0_6 = arith.constant 0 : index
    %17 = vector.load %arg4[%c0_5, %c0_6] : memref<5x32xf32, #tpu.memory_space<vmem>>, vector<1x32xf32>
    tpu.vector_store %arg4[%c0_5, %c0_6], %16 {strides = array<i32>} : memref<5x32xf32, #tpu.memory_space<vmem>>, vector<1x32xf32>,
    %c1_7 = arith.constant 1 : index
    %18 = memref.load %arg2[%c1_7] : memref<5xf32, #tpu.memory_space<smem>>
    %c1_8 = arith.constant 1 : index
    %19 = memref.load %arg1[%c1_8] : memref<15xf32, #tpu.memory_space<smem>>
    %20 = vector.broadcast %19 : f32 to vector<1x32xf32>
    %21 = arith.mulf %20, %0 : vector<1x32xf32>
    %22 = vector.broadcast %18 : f32 to vector<1x32xf32>
    %23 = arith.addf %22, %21 : vector<1x32xf32>
    %c6 = arith.constant 6 : index
    %24 = memref.load %arg1[%c6] : memref<15xf32, #tpu.memory_space<smem>>
    %25 = vector.broadcast %24 : f32 to vector<1x32xf32>
    %26 = arith.mulf %25, %1 : vector<1x32xf32>
    %27 = arith.addf %23, %26 : vector<1x32xf32>
    %c11 = arith.constant 11 : index
    %28 = memref.load %arg1[%c11] : memref<15xf32, #tpu.memory_space<smem>>
    %29 = vector.broadcast %28 : f32 to vector<1x32xf32>
    %30 = arith.mulf %29, %2 : vector<1x32xf32>
    %31 = arith.addf %27, %30 : vector<1x32xf32>
    %c1_9 = arith.constant 1 : index
    %c0_10 = arith.constant 0 : index
    %32 = vector.load %arg4[%c1_9, %c0_10] : memref<5x32xf32, #tpu.memory_space<vmem>>, vector<1x32xf32>
    tpu.vector_store %arg4[%c1_9, %c0_10], %31 {strides = array<i32>} : memref<5x32xf32, #tpu.memory_space<vmem>>, vector<1x32xf32>,
    %c2_11 = arith.constant 2 : index
    %33 = memref.load %arg2[%c2_11] : memref<5xf32, #tpu.memory_space<smem>>
    %c2_12 = arith.constant 2 : index
    %34 = memref.load %arg1[%c2_12] : memref<15xf32, #tpu.memory_space<smem>>
    %35 = vector.broadcast %34 : f32 to vector<1x32xf32>
    %36 = arith.mulf %35, %0 : vector<1x32xf32>
    %37 = vector.broadcast %33 : f32 to vector<1x32xf32>
    %38 = arith.addf %37, %36 : vector<1x32xf32>
    %c7 = arith.constant 7 : index
    %39 = memref.load %arg1[%c7] : memref<15xf32, #tpu.memory_space<smem>>
    %40 = vector.broadcast %39 : f32 to vector<1x32xf32>
    %41 = arith.mulf %40, %1 : vector<1x32xf32>
    %42 = arith.addf %38, %41 : vector<1x32xf32>
    %c12 = arith.constant 12 : index
    %43 = memref.load %arg1[%c12] : memref<15xf32, #tpu.memory_space<smem>>
    %44 = vector.broadcast %43 : f32 to vector<1x32xf32>
    %45 = arith.mulf %44, %2 : vector<1x32xf32>
    %46 = arith.addf %42, %45 : vector<1x32xf32>
    %c2_13 = arith.constant 2 : index
    %c0_14 = arith.constant 0 : index
    %47 = vector.load %arg4[%c2_13, %c0_14] : memref<5x32xf32, #tpu.memory_space<vmem>>, vector<1x32xf32>
    tpu.vector_store %arg4[%c2_13, %c0_14], %46 {strides = array<i32>} : memref<5x32xf32, #tpu.memory_space<vmem>>, vector<1x32xf32>,
    %c3 = arith.constant 3 : index
    %48 = memref.load %arg2[%c3] : memref<5xf32, #tpu.memory_space<smem>>
    %c3_15 = arith.constant 3 : index
    %49 = memref.load %arg1[%c3_15] : memref<15xf32, #tpu.memory_space<smem>>
    %50 = vector.broadcast %49 : f32 to vector<1x32xf32>
    %51 = arith.mulf %50, %0 : vector<1x32xf32>
    %52 = vector.broadcast %48 : f32 to vector<1x32xf32>
    %53 = arith.addf %52, %51 : vector<1x32xf32>
    %c8 = arith.constant 8 : index
    %54 = memref.load %arg1[%c8] : memref<15xf32, #tpu.memory_space<smem>>
    %55 = vector.broadcast %54 : f32 to vector<1x32xf32>
    %56 = arith.mulf %55, %1 : vector<1x32xf32>
    %57 = arith.addf %53, %56 : vector<1x32xf32>
    %c13 = arith.constant 13 : index
    %58 = memref.load %arg1[%c13] : memref<15xf32, #tpu.memory_space<smem>>
    %59 = vector.broadcast %58 : f32 to vector<1x32xf32>
    %60 = arith.mulf %59, %2 : vector<1x32xf32>
    %61 = arith.addf %57, %60 : vector<1x32xf32>
    %c3_16 = arith.constant 3 : index
    %c0_17 = arith.constant 0 : index
    %62 = vector.load %arg4[%c3_16, %c0_17] : memref<5x32xf32, #tpu.memory_space<vmem>>, vector<1x32xf32>
    tpu.vector_store %arg4[%c3_16, %c0_17], %61 {strides = array<i32>} : memref<5x32xf32, #tpu.memory_space<vmem>>, vector<1x32xf32>,
    %c4 = arith.constant 4 : index
    %63 = memref.load %arg2[%c4] : memref<5xf32, #tpu.memory_space<smem>>
    %c4_18 = arith.constant 4 : index
    %64 = memref.load %arg1[%c4_18] : memref<15xf32, #tpu.memory_space<smem>>
    %65 = vector.broadcast %64 : f32 to vector<1x32xf32>
    %66 = arith.mulf %65, %0 : vector<1x32xf32>
    %67 = vector.broadcast %63 : f32 to vector<1x32xf32>
    %68 = arith.addf %67, %66 : vector<1x32xf32>
    %c9 = arith.constant 9 : index
    %69 = memref.load %arg1[%c9] : memref<15xf32, #tpu.memory_space<smem>>
    %70 = vector.broadcast %69 : f32 to vector<1x32xf32>
    %71 = arith.mulf %70, %1 : vector<1x32xf32>
    %72 = arith.addf %68, %71 : vector<1x32xf32>
    %c14 = arith.constant 14 : index
    %73 = memref.load %arg1[%c14] : memref<15xf32, #tpu.memory_space<smem>>
    %74 = vector.broadcast %73 : f32 to vector<1x32xf32>
    %75 = arith.mulf %74, %2 : vector<1x32xf32>
    %76 = arith.addf %72, %75 : vector<1x32xf32>
    %c4_19 = arith.constant 4 : index
    %c0_20 = arith.constant 0 : index
    %77 = vector.load %arg4[%c4_19, %c0_20] : memref<5x32xf32, #tpu.memory_space<vmem>>, vector<1x32xf32>
    tpu.vector_store %arg4[%c4_19, %c0_20], %76 {strides = array<i32>} : memref<5x32xf32, #tpu.memory_space<vmem>>, vector<1x32xf32>,
    return
  }
  func.func @transform_0(%arg0: i32) -> i32 {
    %c0_i32 = arith.constant 0 : i32
    %c0_i32_0 = arith.constant 0 : i32
    return %c0_i32 : i32
  }
  func.func @transform_1(%arg0: i32) -> i32 {
    %c0_i32 = arith.constant 0 : i32
    %c0_i32_0 = arith.constant 0 : i32
    return %c0_i32 : i32
  }
  func.func @transform_2(%arg0: i32) -> (i32, i32) {
    %c0_i32 = arith.constant 0 : i32
    %c0_i32_0 = arith.constant 0 : i32
    return %c0_i32, %arg0 : i32, i32
  }
  func.func @transform_3(%arg0: i32) -> (i32, i32) {
    %c0_i32 = arith.constant 0 : i32
    %c0_i32_0 = arith.constant 0 : i32
    return %c0_i32, %arg0 : i32, i32
  }
}

</mosaic_0001>

<bundles_post_ra>
// kernel: tpu_custom_call.1
= control target key start
LH: loop header
LB: loop body
LE: loop exit
PB: predicated region body
PF: predicated region fallthrough
CT: control target
= control target key end

     0   :  { %8 = vsyncpa [#allocation5], 0  ;;  %s322_s0 = inlined_call_operand.hbm [shape: f32[15], index: 0, kind: input, shape index: {}]   ;;  %s323_s1 = inlined_call_operand.hbm [shape: f32[5], index: 1, kind: input, shape index: {}]   ;;  %s324_s2 = inlined_call_operand.hbm [shape: f32[3,32], index: 2, kind: input, shape index: {}]   ;;  %s325_s3 = inlined_call_operand.hbm [shape: f32[5,32], index: 3, kind: output, shape index: {}]  }
   0x1   :  { %9 = vsyncpa [#allocation7], 0 }
   0x2   :  { %10 = vsyncpa [#allocation3], 0 }
   0x3   :  { %11 = vsyncpa [#allocation4], 0  ;;  %s17_s14 = sshll.u32 %s322_s0, 4  ;;  %s26_s17 = sshll.u32 %s323_s1, 4  ;;  %s18_s14 = int_to_ptr.hbm [resolvable:$true] %s17_s14  ;;  %s27_s17 = int_to_ptr.hbm [resolvable:$true] %s26_s17 }
   0x4   :  { %s254_s18 = smov [#allocation2]   ;;  %s255_s19 = smov [#allocation6]  }
   0x5   :  { %20 = dma.hbm_to_smem %s18_s14, 16, %s254_s18, [#allocation5]  }
   0x6   :  { %29 = dma.hbm_to_smem %s27_s17, 16, %s255_s19, [#allocation7]  }
   0x7   :  { %s35_s22 = sshll.u32 %s324_s2, 4  ;;  %s256_s23 = smov [#allocation8]   ;;  %s36_s22 = int_to_ptr.hbm [resolvable:$true] %s35_s22 }
   0x8   :  { %s37_s24 = sshll.u32 %s256_s23, 4  ;;  %s38_s24 = int_to_ptr.vmem [resolvable:$true] %s37_s24 }
   0x9   :  { %40 = dma.hbm_to_vmem [thread:$0]  %s36_s22, 64, %s38_s24, [#allocation3]  }
   0xa   :  { %246 = dma.done.wait [#allocation5], 16  }
   0xb   :  { %247 = vsyncadd [#allocation5], 4294967280 }
   0xc   :  { %248 = dma.done.wait [#allocation7], 16  }
   0xd   :  { %249 = vsyncadd [#allocation7], 4294967280 }
   0xe   :  { %250 = dma.done.wait [#allocation3], 64  }
   0xf   :  { %251 = vsyncadd [#allocation3], 4294967232 }
  0x10   :  { %53 = sfence }
  0x11   :  { %s57_s0 = sld [smem:[#allocation6]]  ;;  %v287_v0 = vld [vmem:[#allocation8] sm:$0x1]  ;;  %v289_v1 = vld [vmem:[#allocation8 + $0x1] sm:$0x1]  ;;  %vm71_vm0 = vcmask 253952  }
  0x12   :  { %s58_s1 = sld [smem:[#allocation2]]  ;;  %v291_v2 = vld [vmem:[#allocation8 + $0x2] sm:$0x1]  ;;  %s257_s15 = smov [#allocation9]  }
  0x13   :  { %s152_s25 = sld [smem:[#allocation2 + $0x5]]  ;;  %s138_s16 = sshll.u32 %s257_s15, 4  ;;  %s139_s16 = int_to_ptr.vmem [resolvable:$true] %s138_s16 }
  0x14   :  { %s153_s26 = sld [smem:[#allocation2 + $0xa]]  ;;  %s140_s19 = sshll.u32 %s325_s3, 4  ;;  %s141_s19 = int_to_ptr.hbm [resolvable:$true] %s140_s19 }
  0x15   :  { %s154_s27 = sld [smem:[#allocation6 + $0x1]] }
  0x16   :  { %s155_s2 = sld [smem:[#allocation2 + $0x1]] }
  0x17   :  { %s156_s28 = sld [smem:[#allocation2 + $0x6]]  ;;  %v61_v4 = vstv %s57_s0 }
  0x18   :  { %v59_v3 = vstv %s58_s1  ;;  %s157_s29 = sld [smem:[#allocation2 + $0xb]] }
  0x19   :  { %v60_v5 = vmul.f32 %v59_v3, %v287_v0  ;;  %v64_v6 = vstv %s152_s25  ;;  %s294_s30 = sld [smem:[#allocation6 + $0x2]] }
  0x1a   :  { %v65_v7 = vmul.f32 %v64_v6, %v289_v1  ;;  %v68_v8 = vstv %s153_s26  ;;  %s159_s4 = sld [smem:[#allocation2 + $0x2]] }
  0x1b   :  { %v62_v9 = vadd.f32 %v61_v4, %v60_v5  ;;  %v69_v10 = vmul.f32 %v68_v8, %v291_v2  ;;  %s160_s5 = sld [smem:[#allocation2 + $0x7]]  ;;  %v77_v12 = vstv %s154_s27 }
  0x1c   :  { %v75_v11 = vstv %s155_s2  ;;  %s161_s6 = sld [smem:[#allocation2 + $0xc]] }
  0x1d   :  { %v66_v13 = vadd.f32 %v65_v7, %v62_v9  ;;  %v76_v14 = vmul.f32 %v75_v11, %v287_v0  ;;  %v80_v15 = vstv %s156_s28  ;;  %s299_s7 = sld [smem:[#allocation6 + $0x3]] }
  0x1e   :  { %v81_v16 = vmul.f32 %v80_v15, %v289_v1  ;;  %v84_v17 = vstv %s157_s29  ;;  %s163_s8 = sld [smem:[#allocation2 + $0x3]] }
  0x1f   :  { %v70_v18 = vadd.f32 %v69_v10, %v66_v13  ;;  %v78_v19 = vadd.f32 %v77_v12, %v76_v14  ;;  %v85_v20 = vmul.f32 %v84_v17, %v291_v2  ;;  %s164_s9 = sld [smem:[#allocation2 + $0x8]]  ;;  %v92_v22 = vstv %s294_s30 }
  0x20   :  { %v90_v21 = vstv %s159_s4  ;;  %s165_s10 = sld [smem:[#allocation2 + $0xd]] }
  0x21   :  { %72 = vst.msk [vmem:[#allocation9] sm:$0x1] %vm71_vm0, %v70_v18  ;;  %v82_v23 = vadd.f32 %v81_v16, %v78_v19  ;;  %v91_v24 = vmul.f32 %v90_v21, %v287_v0  ;;  %v95_v25 = vstv %s160_s5  ;;  %s166_s11 = sld [smem:[#allocation6 + $0x4]] }
  0x22   :  { %v96_v26 = vmul.f32 %v95_v25, %v289_v1  ;;  %v99_v27 = vstv %s161_s6  ;;  %s167_s12 = sld [smem:[#allocation2 + $0x4]] }
  0x23   :  { %v86_v28 = vadd.f32 %v85_v20, %v82_v23  ;;  %v93_v29 = vadd.f32 %v92_v22, %v91_v24  ;;  %v100_v30 = vmul.f32 %v99_v27, %v291_v2  ;;  %s168_s13 = sld [smem:[#allocation2 + $0x9]]  ;;  %v107_v32 = vstv %s299_s7 }
  0x24   :  { %v105_v31 = vstv %s163_s8  ;;  %s169_s14 = sld [smem:[#allocation2 + $0xe]] }
  0x25   :  { %87 = vst.msk [vmem:[#allocation9 + $0x1] sm:$0x1] %vm71_vm0, %v86_v28  ;;  %v97_v33 = vadd.f32 %v96_v26, %v93_v29  ;;  %v106_v34 = vmul.f32 %v105_v31, %v287_v0  ;;  %v110_v35 = vstv %s164_s9 }
  0x26   :  { %v111_v36 = vmul.f32 %v110_v35, %v289_v1  ;;  %v114_v37 = vstv %s165_s10 }
  0x27   :  { %v101_v38 = vadd.f32 %v100_v30, %v97_v33  ;;  %v108_v39 = vadd.f32 %v107_v32, %v106_v34  ;;  %v115_v40 = vmul.f32 %v114_v37, %v291_v2  ;;  %v122_v42 = vstv %s166_s11 }
  0x28   :  { %v120_v41 = vstv %s167_s12 }
  0x29   :  { %102 = vst.msk [vmem:[#allocation9 + $0x2] sm:$0x1] %vm71_vm0, %v101_v38  ;;  %v112_v43 = vadd.f32 %v111_v36, %v108_v39  ;;  %v121_v44 = vmul.f32 %v120_v41, %v287_v0  ;;  %v125_v45 = vstv %s168_s13 }
  0x2a   :  { %v126_v46 = vmul.f32 %v125_v45, %v289_v1  ;;  %v129_v47 = vstv %s169_s14 }
  0x2b   :  { %v116_v48 = vadd.f32 %v115_v40, %v112_v43  ;;  %v123_v49 = vadd.f32 %v122_v42, %v121_v44  ;;  %v130_v50 = vmul.f32 %v129_v47, %v291_v2 }
  0x2d   :  { %117 = vst.msk [vmem:[#allocation9 + $0x3] sm:$0x1] %vm71_vm0, %v116_v48  ;;  %v127_v51 = vadd.f32 %v126_v46, %v123_v49 }
  0x2f   :  { %v131_v52 = vadd.f32 %v130_v50, %v127_v51 }
  0x31   :  { %132 = vst.msk [vmem:[#allocation9 + $0x4] sm:$0x1] %vm71_vm0, %v131_v52 }
  0x32   :  { %143 = dma.vmem_to_hbm [thread:$0]  %s139_s16, 128, %s141_s19, [#allocation4]  }
  0x33   :  { %252 = dma.done.wait [#allocation4], 128  }
  0x34   :  { %253 = vsyncadd [#allocation4], 4294967168 }
  0x35   :  { %148 = vsyncpa [#allocation3], 1 }
  0x36   :  { %149 = vsyncpa [#allocation4], 1 }
  0x37   :  { %150 = vsyncpa [#allocation5], 1 }
  0x38   :  { %151 = vsyncpa [#allocation7], 1 }

</bundles_post_ra>
